<compile_context>
chip_gen: v5e
topology: v5e:2x2
jax: 0.10.0
libtpu: 0.0.40
codegen_flags: <defaults>
</compile_context>

<pallas_src>
import functools

import jax
import jax.numpy as jnp
from jax import lax
from jax.experimental import pallas as pl
from jax.experimental.pallas import tpu as pltpu


# ---------------------------------------------------------------------------
# Fused kernel:  out[0, :TB] = w_row . x_tile[r, :]  for every row r
#   w_ref: (8, D)   row 0 = summed leaf weights, rows 1..7 = 0
#   x_ref: (TB, D)  streamed batch tile
#   o_ref: (1, TB)  lane-dense result row
# ---------------------------------------------------------------------------
def _fused_or_kernel(w_ref, x_ref, o_ref):
    res = lax.dot_general(
        w_ref[...], x_ref[...],
        dimension_numbers=(((1,), (1,)), ((), ())),   # contract D with D
        preferred_element_type=jnp.float32,
    )                                                  # (8, TB) f32
    o_ref[...] = res[0:1, :]                           # unmasked lane-dense store


def _round_up(x, m):
    return ((x + m - 1) // m) * m


def _choose_batch_tile(B, D, itemsize, budget_bytes):
    """Byte-capped batch tile (sublane-aligned); prefers an even tile count."""
    row_align = max(8, 32 // itemsize)                 # 8 rows f32, 16 rows bf16
    rows = max(row_align, (budget_bytes // (D * itemsize)) // row_align * row_align)
    if rows >= B:
        return B, 1                                    # single full block
    n = pl.cdiv(B, rows)
    if n % 2:                                          # v7x: 2 TCs per chip
        n += 1
        rows = _round_up(pl.cdiv(B, n), row_align)
    n = pl.cdiv(B, rows)
    return rows, n


def fused_or_forward(x, w8, *, x_tile_budget_bytes=6 << 20):
    """One pallas_call for the whole tree.  x: [B, D], w8: [8, D] (row 0 used)."""
    B, D = x.shape
    if w8.dtype != x.dtype:
        w8 = w8.astype(x.dtype)                        # tiny (8, D) cast
    TB, n_tiles = _choose_batch_tile(B, D, x.dtype.itemsize, x_tile_budget_bytes)

    out = pl.pallas_call(
        _fused_or_kernel,
        out_shape=jax.ShapeDtypeStruct((n_tiles, TB), jnp.float32),
        grid_spec=pltpu.PrefetchScalarGridSpec(
            num_scalar_prefetch=0,
            grid=(n_tiles,),
            in_specs=[
                pl.BlockSpec((8, D), lambda i: (0, 0)),    # resident weight row
                pl.BlockSpec((TB, D), lambda i: (i, 0)),   # streamed x tile
            ],
            out_specs=pl.BlockSpec((1, TB), lambda i: (i, 0)),
        ),
        compiler_params=pltpu.CompilerParams(
            dimension_semantics=("parallel",),
            vmem_limit_bytes=32 * 1024 * 1024,
        ),
    )(w8, x)
    # Ragged last tile: lanes >= B of the flattened output hold garbage derived
    # from out-of-bounds input rows; they are discarded here, never read back.
    return out.reshape(-1)[:B].reshape(B, 1)


# ---------------------------------------------------------------------------
# Fallback OR-sum kernel (only for non-linear children that cannot be fused).
# Batch-tiled; unexercised in this demo.
# ---------------------------------------------------------------------------
def _or_sum_kernel(c_ref, o_ref):
    o_ref[...] = jnp.sum(c_ref[...].astype(jnp.float32), axis=1, keepdims=True)


def or_sum_forward(child_outputs):
    # TODO(synk): only reached for non-linear children (none exist here).
    B, K = child_outputs.shape
    TB = B if B <= 1024 else 1024
    n = pl.cdiv(B, TB)
    return pl.pallas_call(
        _or_sum_kernel,
        out_shape=jax.ShapeDtypeStruct((B, 1), jnp.float32),
        grid_spec=pltpu.PrefetchScalarGridSpec(
            num_scalar_prefetch=0,
            grid=(n,),
            in_specs=[pl.BlockSpec((TB, K), lambda i: (i, 0))],
            out_specs=pl.BlockSpec((TB, 1), lambda i: (i, 0)),
        ),
        compiler_params=pltpu.CompilerParams(
            dimension_semantics=("parallel",),
            vmem_limit_bytes=32 * 1024 * 1024,
        ),
    )(child_outputs)


# ---------------------------------------------------------------------------
# Node classes (structure in Python; all numerics in one fused kernel)
# ---------------------------------------------------------------------------
class LeafNode:
    """Synthetic leaf child producing a [B, 1] output via a linear map."""

    def __init__(self, weight):
        self.weight = weight                                   # (D, 1)
        D = weight.shape[0]
        self._w8 = jnp.zeros((8, D), weight.dtype).at[0].set(weight.reshape(-1))

    def forward(self, x, marginalized_variables=None):
        return fused_or_forward(x, self._w8)


class RecursiveORNode:
    """OR gate: concat child outputs along dim=1 and sum (keepdim=True)."""

    def __init__(self, children_nodes):
        self.children_nodes = list(children_nodes)
        self._w8 = self._try_flatten()

    def _try_flatten(self):
        # Valid because LeafNode children are pure linear maps that ignore
        # `marginalized_variables`; any other child type disables fusion.
        ws = []
        stack = list(self.children_nodes)
        while stack:
            n = stack.pop()
            if isinstance(n, LeafNode):
                ws.append(n.weight.astype(jnp.float32).reshape(-1))
            elif isinstance(n, RecursiveORNode):
                stack.extend(n.children_nodes)
            else:
                return None
        if not ws:
            return None
        w_row = functools.reduce(jnp.add, ws)                  # (D,), done once
        D = w_row.shape[0]
        return jnp.zeros((8, D), jnp.float32).at[0].set(w_row)

    def forward(self, x, marginalized_variables=None):
        if self._w8 is not None:
            # Fully fused: ONE pallas_call for the entire OR tree.
            # (f32 summation order differs from per-child evaluation; not
            #  bit-exact with the PyTorch reference, same up to ~1e-5 rel.)
            return fused_or_forward(x, self._w8)
        child_outputs = jnp.concatenate(
            [c.forward(x, marginalized_variables) for c in self.children_nodes],
            axis=1,
        )
        return or_sum_forward(child_outputs)


# ---------------------------------------------------------------------------
# Pure-JAX reference (faithful per-child recursion, like the PyTorch module)
# ---------------------------------------------------------------------------
def _ref_forward(node, x):
    if isinstance(node, LeafNode):
        return x.astype(jnp.float32) @ node.weight.astype(jnp.float32)
    outs = jnp.concatenate([_ref_forward(c, x) for c in node.children_nodes],
                           axis=1)
    return jnp.sum(outs, axis=1, keepdims=True)


if __name__ == "__main__":
    B, D = 64, 128
    key = jax.random.PRNGKey(0)
    kx, k1, k2, k3, k4, kx2 = jax.random.split(key, 6)

    x = jax.random.normal(kx, (B, D), dtype=jnp.float32)
    leaves = [
        LeafNode(jax.random.normal(k, (D, 1), dtype=jnp.float32))
        for k in (k1, k2, k3, k4)
    ]

    # Recursive structure:  OR( leaf1, leaf2, OR( leaf3, leaf4 ) )
    inner = RecursiveORNode([leaves[2], leaves[3]])
    root = RecursiveORNode([leaves[0], leaves[1], inner])

    # 1) f32 fused forward (module semantics).
    out = root.forward(x)
    jax.block_until_ready(out)
    ref = _ref_forward(root, x)
    assert out.shape == (B, 1), out.shape
    assert jnp.allclose(out, ref, atol=1e-3, rtol=1e-4)

    # 2) bf16 inputs (optional bandwidth-halving path, f32 accumulation).
    out_bf = root.forward(x.astype(jnp.bfloat16))
    jax.block_until_ready(out_bf)
    assert out_bf.shape == (B, 1)
    assert jnp.allclose(out_bf, ref, atol=0.5, rtol=0.05)

    # 3) Multi-tile grid with a ragged last block (no jnp.pad of x).
    B2 = 200
    x2 = jax.random.normal(kx2, (B2, D), dtype=jnp.float32)
    out2 = fused_or_forward(x2, root._w8, x_tile_budget_bytes=64 * D * 4)
    jax.block_until_ready(out2)
    ref2 = _ref_forward(root, x2)
    assert out2.shape == (B2, 1)
    assert jnp.allclose(out2, ref2, atol=1e-3, rtol=1e-4)

    print("KERNEL_OK")
</pallas_src>

<mosaic_0001>
module attributes {stable_mosaic.version = 11 : i64} {
  func.func @_fused_or_kernel(%arg0: i32, %arg1: memref<8x128xf32, #tpu.memory_space<vmem>>, %arg2: memref<64x128xf32, #tpu.memory_space<vmem>>, %arg3: memref<1x64xf32, #tpu.memory_space<vmem>>) attributes {dimension_semantics = [#tpu.dimension_semantics<parallel>], iteration_bounds = array<i64: 1>, scalar_prefetch = 0 : i64, scratch_operands = 0 : i64, tpu.core_type = #tpu.core_type<tc>, window_params = [{pipeline_mode = #tpu.pipeline_mode<synchronous>, transform_indices = @transform_0, window_bounds = array<i64: 8, 128>}, {transform_indices = @transform_1, window_bounds = array<i64: 64, 128>}, {transform_indices = @transform_2, window_bounds = array<i64: 1, 64>}]} {
    %c0 = arith.constant 0 : index
    %c0_0 = arith.constant 0 : index
    %0 = vector.load %arg1[%c0, %c0_0] : memref<8x128xf32, #tpu.memory_space<vmem>>, vector<8x128xf32>
    %c0_1 = arith.constant 0 : index
    %c0_2 = arith.constant 0 : index
    %1 = vector.load %arg2[%c0_1, %c0_2] : memref<64x128xf32, #tpu.memory_space<vmem>>, vector<64x128xf32>
    %cst = arith.constant dense<0.000000e+00> : vector<8x64xf32>
    %2 = tpu.matmul %0, %1, %cst {dimension_numbers = #tpu.dot_dimension_numbers<[1], [1], [0], [0], [0, 0, 1, 0], [], []>} : vector<8x128xf32>, vector<64x128xf32>, vector<8x64xf32> -> vector<8x64xf32>
    %3 = vector.extract_strided_slice %2 {offsets = [0, 0], sizes = [1, 64], strides = [1, 1]} : vector<8x64xf32> to vector<1x64xf32>
    %c0_3 = arith.constant 0 : index
    %c0_4 = arith.constant 0 : index
    %4 = vector.load %arg3[%c0_3, %c0_4] : memref<1x64xf32, #tpu.memory_space<vmem>>, vector<1x64xf32>
    tpu.vector_store %arg3[%c0_3, %c0_4], %3 {strides = array<i32>} : memref<1x64xf32, #tpu.memory_space<vmem>>, vector<1x64xf32>,
    return
  }
  func.func @transform_0(%arg0: i32) -> (i32, i32) {
    %c0_i32 = arith.constant 0 : i32
    %c0_i32_0 = arith.constant 0 : i32
    %c0_i32_1 = arith.constant 0 : i32
    return %c0_i32, %c0_i32_0 : i32, i32
  }
  func.func @transform_1(%arg0: i32) -> (i32, i32) {
    %c0_i32 = arith.constant 0 : i32
    %c0_i32_0 = arith.constant 0 : i32
    return %arg0, %c0_i32 : i32, i32
  }
  func.func @transform_2(%arg0: i32) -> (i32, i32) {
    %c0_i32 = arith.constant 0 : i32
    %c0_i32_0 = arith.constant 0 : i32
    return %arg0, %c0_i32 : i32, i32
  }
}

</mosaic_0001>

<bundles_post_ra>
// kernel: tpu_custom_call.1
= control target key start
LH: loop header
LB: loop body
LE: loop exit
PB: predicated region body
PF: predicated region fallthrough
CT: control target
= control target key end

     0   :  { %7 = vsyncpa [#allocation3], 0  ;;  %s203_s0 = inlined_call_operand.hbm [shape: f32[8,128], index: 0, kind: input, shape index: {}]   ;;  %s204_s1 = inlined_call_operand.hbm [shape: f32[64,128], index: 1, kind: input, shape index: {}]   ;;  %s205_s2 = inlined_call_operand.hbm [shape: f32[1,64], index: 2, kind: output, shape index: {}]  }
   0x1   :  { %8 = vsyncpa [#allocation6], 0 }
   0x2   :  { %9 = vsyncpa [#allocation4], 0  ;;  %s15_s11 = sshll.u32 %s203_s0, 4  ;;  %s174_s12 = smov [#allocation2]   ;;  %s16_s11 = int_to_ptr.hbm [resolvable:$true] %s15_s11 }
   0x3   :  { %s17_s13 = sshll.u32 %s174_s12, 4  ;;  %s25_s16 = sshll.u32 %s204_s1, 4  ;;  %s18_s13 = int_to_ptr.vmem [resolvable:$true] %s17_s13  ;;  %s26_s16 = int_to_ptr.hbm [resolvable:$true] %s25_s16 }
   0x4   :  { %20 = dma.hbm_to_vmem [thread:$0]  %s16_s11, 128, %s18_s13, [#allocation3]  }
   0x5   :  { %s175_s17 = smov [#allocation5]   ;;  %s176_s19 = smov 128  }
   0x6   :  { %s27_s18 = sshll.u32 %s175_s17, 4  ;;  %s177_s20 = smov 8   ;;  %s28_s18 = int_to_ptr.vmem [resolvable:$true] %s27_s18 }
   0x7   :  { %33 = dma.hbm_to_vmem [thread:$0]  %s26_s16, 1024, %s28_s18, [#allocation6], %s176_s19, %s176_s19, %s177_s20  }
   0x8   :  { %168 = dma.done.wait [#allocation3], 128  }
   0x9   :  { %169 = vsyncadd [#allocation3], 4294967168 }
   0xa   :  { %170 = dma.done.wait [#allocation6], 1024  }
   0xb   :  { %171 = vsyncadd [#allocation6], 4294966272  ;;  %v50_v0 = vld [vmem:[#allocation5 + $0x38] sm:$0xff]  ;;  %v49_v1 = vld [vmem:[#allocation5 + $0x30] sm:$0xff]  ;;  %s178_s0 = smov [#allocation7]   ;;  %s80_s23 = sshll.u32 %s205_s2, 4  ;;  %s81_s23 = int_to_ptr.hbm [resolvable:$true] %s80_s23 }
   0xc   :  { %59 = vmatpush.xpose.msra.mxu0 %v50_v0  ;;  %v48_v2 = vld [vmem:[#allocation5 + $0x28] sm:$0xff]  ;;  %v47_v3 = vld [vmem:[#allocation5 + $0x20] sm:$0xff]  ;;  %v46_v4 = vld [vmem:[#allocation5 + $0x18] sm:$0xff]  ;;  %s78_s1 = sshll.u32 %s178_s0, 4  ;;  %vm71_vm0 = vcmask 516096   ;;  %s79_s1 = int_to_ptr.vmem [resolvable:$true] %s78_s1 }
   0xd   :  { %v45_v5 = vld [vmem:[#allocation5 + $0x10] sm:$0xff]  ;;  %v44_v6 = vld [vmem:[#allocation5 + $0x8] sm:$0xff]  ;;  %v43_v7 = vld [vmem:[#allocation5] sm:$0xff] }
   0xe   :  { %v42_v8 = vld [vmem:[#allocation2] sm:$0xff] }
  0x10   :  { %60 = vmatpush.xpose.msra.mxu0 %v49_v1 }
  0x14   :  { %61 = vmatpush.xpose.msra.mxu0 %v48_v2 }
  0x18   :  { %62 = vmatpush.xpose.msra.mxu0 %v47_v3 }
  0x1c   :  { %63 = vmatpush.xpose.msra.mxu0 %v46_v4 }
  0x20   :  { %64 = vmatpush.xpose.msra.mxu0 %v45_v5 }
  0x24   :  { %65 = vmatpush.xpose.msra.mxu0 %v44_v6 }
  0x28   :  { %66 = vmatpush.xpose.msra.mxu0 %v43_v7 }
  0x2b   :  { %67 = vmatmul.f32.vlgmr.msra.gmra.mxu0 %v42_v8 }
  0xa8   :  { %v68_v9 = vpop.f32.mrf.mxu0 }
  0xa9   :  { %72 = vst.msk [vmem:[#allocation7] sm:$0x1] %vm71_vm0, %v68_v9 }
  0xaa   :  { %83 = dma.vmem_to_hbm [thread:$0]  %s79_s1, 16, %s81_s23, [#allocation4]  }
  0xab   :  { %172 = dma.done.wait [#allocation4], 16  }
  0xac   :  { %173 = vsyncadd [#allocation4], 4294967280 }
  0xad   :  { %88 = vsyncpa [#allocation3], 1 }
  0xae   :  { %89 = vsyncpa [#allocation6], 1 }
  0xaf   :  { %90 = vsyncpa [#allocation4], 1 }

</bundles_post_ra>
